<compile_context>
chip_gen: v7x
topology: tpu7x:2x2x1
jax: 0.10.0
libtpu: 0.0.40
codegen_flags: <defaults>
</compile_context>

<pallas_src>
import jax
import jax.numpy as jnp
from jax import lax
from jax.experimental import pallas as pl
from jax.experimental.pallas import tpu as pltpu


def _round_up(x, m):
    return ((x + m - 1) // m) * m


# ----------------------------- Pallas kernel --------------------------------
def mlp_kernel(u_ref, i_ref,
               w1u_ref, w1i_ref, b1_ref,
               w2_ref, b2_ref,
               w3_ref, b3_ref,
               wot_ref, bo_ref,
               out_ref):
    # u/i: (TILE_B, E) embedding tiles. The concat is fused away: fc1 is
    # u @ w1[:E] + i @ w1[E:], so no [B, 2E] intermediate ever hits HBM.
    u = u_ref[...]
    it = i_ref[...]

    # fc1: 2E -> 32, ReLU  (two dots summed == concat + single dot)
    v = (jnp.dot(u, w1u_ref[...], preferred_element_type=jnp.float32)
         + jnp.dot(it, w1i_ref[...], preferred_element_type=jnp.float32)
         + b1_ref[...])
    v = jnp.maximum(v, 0.0)

    # fc2: 32 -> 16, ReLU
    v = jnp.dot(v, w2_ref[...], preferred_element_type=jnp.float32) + b2_ref[...]
    v = jnp.maximum(v, 0.0)

    # fc3: 16 -> 8, ReLU
    v = jnp.dot(v, w3_ref[...], preferred_element_type=jnp.float32) + b3_ref[...]
    v = jnp.maximum(v, 0.0)

    # Output layer 8 -> 1, computed transposed: (1, 8) x (TILE_B, 8)^T
    # -> (1, TILE_B), so the store is lane-dense (batch along lanes).
    logits = lax.dot_general(
        wot_ref[...], v,
        dimension_numbers=(((1,), (1,)), ((), ())),
        preferred_element_type=jnp.float32) + bo_ref[...]
    out_ref[...] = jax.nn.sigmoid(logits)


def mlp_pallas(user_emb, item_emb, params, tile_b=None):
    """user_emb/item_emb: [B, E] float32; params: dict of (in, out)-layout weights."""
    B, E = user_emb.shape
    assert item_emb.shape == (B, E)

    if tile_b is None:
        # (tile_b, E) f32 tile is <= 64 KiB at tile_b=512 -> double-buffered
        # inputs stay far under even v7x's 32 MiB scoped VMEM default.
        tile_b = min(512, _round_up(B, 128))
    B_pad = _round_up(B, tile_b)
    if B_pad != B:
        pad = ((0, B_pad - B), (0, 0))
        user_emb = jnp.pad(user_emb, pad)
        item_emb = jnp.pad(item_emb, pad)
    num_tiles = B_pad // tile_b

    # Split fc1 weight for the fused concat; pre-transpose the output weight so
    # the kernel's final matmul produces a lane-major (1, TILE_B) result.
    w1u = params["w1"][:E]          # (E, 32)
    w1i = params["w1"][E:]          # (E, 32)
    wot = params["wo"].T            # (1, 8)

    weights = (w1u, w1i, params["b1"],
               params["w2"], params["b2"],
               params["w3"], params["b3"],
               wot, params["bo"])

    # NOTE: these lambdas do not close over any loop variable (late-binding
    # bug from the previous version is gone).
    emb_spec = pl.BlockSpec((tile_b, E), lambda i: (i, 0))
    weight_specs = [pl.BlockSpec(w.shape, lambda i: (0, 0)) for w in weights]

    out = pl.pallas_call(
        mlp_kernel,
        out_shape=jax.ShapeDtypeStruct((1, B_pad), jnp.float32),
        grid=(num_tiles,),
        in_specs=[emb_spec, emb_spec] + weight_specs,
        out_specs=pl.BlockSpec((1, tile_b), lambda i: (0, i)),
        compiler_params=pltpu.CompilerParams(
            dimension_semantics=("parallel",)),
    )(user_emb, item_emb, *weights)

    return out.reshape(B_pad, 1)[:B]


# --------------------------- Module wrapper ----------------------------------
class MultiLayerPerceptronPallas:
    def __init__(self, num_users, num_items, embedding_size=32,
                 layers=(64, 32, 16, 8), key=None):
        if key is None:
            key = jax.random.PRNGKey(0)
        self.num_users = num_users
        self.num_items = num_items
        self.embedding_size = embedding_size
        self.layers = list(layers)

        keys = jax.random.split(key, 2 + len(layers))
        k = iter(keys)

        # Embedding tables (~N(0,1), like nn.Embedding default), kept f32 to
        # match PyTorch semantics exactly.
        self.emb_user = jax.random.normal(next(k), (num_users, embedding_size), jnp.float32)
        self.emb_item = jax.random.normal(next(k), (num_items, embedding_size), jnp.float32)

        def linear_init(key_, in_size, out_size):
            # PyTorch nn.Linear default: U(-1/sqrt(in), 1/sqrt(in)); stored as
            # (in, out) so the kernel does x @ W.
            kw, kb = jax.random.split(key_)
            bound = 1.0 / (in_size ** 0.5)
            w = jax.random.uniform(kw, (in_size, out_size), jnp.float32, -bound, bound)
            b = jax.random.uniform(kb, (1, out_size), jnp.float32, -bound, bound)
            return w, b

        w1, b1 = linear_init(next(k), layers[0], layers[1])
        w2, b2 = linear_init(next(k), layers[1], layers[2])
        w3, b3 = linear_init(next(k), layers[2], layers[3])
        wo, bo = linear_init(next(k), layers[3], 1)
        self.params = dict(w1=w1, b1=b1, w2=w2, b2=b2, w3=w3, b3=b3, wo=wo, bo=bo)

    def __call__(self, user_indices, item_indices):
        # TODO(synk): embedding row-gather stays in XLA (jnp.take); fusing it
        # fully would need PrefetchScalarGridSpec + per-row DMA gather. The
        # concat materialization, however, is eliminated (fused into fc1).
        user_emb = jnp.take(self.emb_user, user_indices, axis=0)   # [B, 32]
        item_emb = jnp.take(self.emb_item, item_indices, axis=0)   # [B, 32]
        return mlp_pallas(user_emb, item_emb, self.params)         # [B, 1] in (0,1)


# Pure-JAX reference for correctness checking (mirrors the PyTorch forward).
def reference_forward(model, user_indices, item_indices):
    p = model.params
    u = jnp.take(model.emb_user, user_indices, axis=0)
    it = jnp.take(model.emb_item, item_indices, axis=0)
    v = jnp.concatenate([u, it], axis=-1)
    v = jnp.maximum(v @ p["w1"] + p["b1"], 0.0)
    v = jnp.maximum(v @ p["w2"] + p["b2"], 0.0)
    v = jnp.maximum(v @ p["w3"] + p["b3"], 0.0)
    return jax.nn.sigmoid(v @ p["wo"] + p["bo"])


if __name__ == "__main__":
    num_users, num_items = 10, 20
    batch = 8

    key = jax.random.PRNGKey(0)
    k_model, k_u, k_i = jax.random.split(key, 3)

    model = MultiLayerPerceptronPallas(num_users, num_items, key=k_model)

    user_idx = jax.random.randint(k_u, (batch,), 0, num_users, dtype=jnp.int32)
    item_idx = jax.random.randint(k_i, (batch,), 0, num_items, dtype=jnp.int32)

    rating = model(user_idx, item_idx)
    rating = jax.block_until_ready(rating)

    ref = reference_forward(model, user_idx, item_idx)
    assert rating.shape == (batch, 1)
    assert bool(jnp.all(jnp.isfinite(rating)))
    assert bool(jnp.allclose(rating, ref, atol=1e-5, rtol=1e-4))

    print("KERNEL_OK")
</pallas_src>

<mosaic_0001>
module attributes {stable_mosaic.version = 11 : i64} {
  func.func @mlp_kernel(%arg0: i32, %arg1: memref<128x32xf32, #tpu.memory_space<vmem>>, %arg2: memref<128x32xf32, #tpu.memory_space<vmem>>, %arg3: memref<32x32xf32, #tpu.memory_space<vmem>>, %arg4: memref<32x32xf32, #tpu.memory_space<vmem>>, %arg5: memref<1x32xf32, #tpu.memory_space<vmem>>, %arg6: memref<32x16xf32, #tpu.memory_space<vmem>>, %arg7: memref<1x16xf32, #tpu.memory_space<vmem>>, %arg8: memref<16x8xf32, #tpu.memory_space<vmem>>, %arg9: memref<1x8xf32, #tpu.memory_space<vmem>>, %arg10: memref<1x8xf32, #tpu.memory_space<vmem>>, %arg11: memref<1x1xf32, #tpu.memory_space<vmem>>, %arg12: memref<1x128xf32, #tpu.memory_space<vmem>>) attributes {dimension_semantics = [#tpu.dimension_semantics<parallel>], iteration_bounds = array<i64: 1>, scalar_prefetch = 0 : i64, scratch_operands = 0 : i64, tpu.core_type = #tpu.core_type<tc>, window_params = [{transform_indices = @transform_0, window_bounds = array<i64: 128, 32>}, {transform_indices = @transform_1, window_bounds = array<i64: 128, 32>}, {pipeline_mode = #tpu.pipeline_mode<synchronous>, transform_indices = @transform_2, window_bounds = array<i64: 32, 32>}, {pipeline_mode = #tpu.pipeline_mode<synchronous>, transform_indices = @transform_3, window_bounds = array<i64: 32, 32>}, {pipeline_mode = #tpu.pipeline_mode<synchronous>, transform_indices = @transform_4, window_bounds = array<i64: 1, 32>}, {pipeline_mode = #tpu.pipeline_mode<synchronous>, transform_indices = @transform_5, window_bounds = array<i64: 32, 16>}, {pipeline_mode = #tpu.pipeline_mode<synchronous>, transform_indices = @transform_6, window_bounds = array<i64: 1, 16>}, {pipeline_mode = #tpu.pipeline_mode<synchronous>, transform_indices = @transform_7, window_bounds = array<i64: 16, 8>}, {pipeline_mode = #tpu.pipeline_mode<synchronous>, transform_indices = @transform_8, window_bounds = array<i64: 1, 8>}, {pipeline_mode = #tpu.pipeline_mode<synchronous>, transform_indices = @transform_9, window_bounds = array<i64: 1, 8>}, {pipeline_mode = #tpu.pipeline_mode<synchronous>, transform_indices = @transform_10, window_bounds = array<i64: 1, 1>}, {transform_indices = @transform_11, window_bounds = array<i64: 1, 128>}]} {
    %c0 = arith.constant 0 : index
    %c0_0 = arith.constant 0 : index
    %0 = vector.load %arg1[%c0, %c0_0] : memref<128x32xf32, #tpu.memory_space<vmem>>, vector<128x32xf32>
    %c0_1 = arith.constant 0 : index
    %c0_2 = arith.constant 0 : index
    %1 = vector.load %arg2[%c0_1, %c0_2] : memref<128x32xf32, #tpu.memory_space<vmem>>, vector<128x32xf32>
    %c0_3 = arith.constant 0 : index
    %c0_4 = arith.constant 0 : index
    %2 = vector.load %arg3[%c0_3, %c0_4] : memref<32x32xf32, #tpu.memory_space<vmem>>, vector<32x32xf32>
    %cst = arith.constant dense<0.000000e+00> : vector<128x32xf32>
    %3 = tpu.matmul %0, %2, %cst {dimension_numbers = #tpu.dot_dimension_numbers<[1], [0], [0], [1], [0, 0, 1, 1], [], []>} : vector<128x32xf32>, vector<32x32xf32>, vector<128x32xf32> -> vector<128x32xf32>
    %c0_5 = arith.constant 0 : index
    %c0_6 = arith.constant 0 : index
    %4 = vector.load %arg4[%c0_5, %c0_6] : memref<32x32xf32, #tpu.memory_space<vmem>>, vector<32x32xf32>
    %cst_7 = arith.constant dense<0.000000e+00> : vector<128x32xf32>
    %5 = tpu.matmul %1, %4, %cst_7 {dimension_numbers = #tpu.dot_dimension_numbers<[1], [0], [0], [1], [0, 0, 1, 1], [], []>} : vector<128x32xf32>, vector<32x32xf32>, vector<128x32xf32> -> vector<128x32xf32>
    %6 = arith.addf %3, %5 : vector<128x32xf32>
    %c0_8 = arith.constant 0 : index
    %c0_9 = arith.constant 0 : index
    %7 = vector.load %arg5[%c0_8, %c0_9] : memref<1x32xf32, #tpu.memory_space<vmem>>, vector<1x32xf32>
    %8 = vector.broadcast %7 : vector<1x32xf32> to vector<128x32xf32>
    %9 = arith.addf %6, %8 : vector<128x32xf32>
    %cst_10 = arith.constant 0.000000e+00 : f32
    %10 = vector.broadcast %cst_10 : f32 to vector<128x32xf32>
    %11 = arith.maximumf %9, %10 : vector<128x32xf32>
    %c0_11 = arith.constant 0 : index
    %c0_12 = arith.constant 0 : index
    %12 = vector.load %arg6[%c0_11, %c0_12] : memref<32x16xf32, #tpu.memory_space<vmem>>, vector<32x16xf32>
    %cst_13 = arith.constant dense<0.000000e+00> : vector<128x16xf32>
    %13 = tpu.matmul %11, %12, %cst_13 {dimension_numbers = #tpu.dot_dimension_numbers<[1], [0], [0], [1], [0, 0, 1, 1], [], []>} : vector<128x32xf32>, vector<32x16xf32>, vector<128x16xf32> -> vector<128x16xf32>
    %c0_14 = arith.constant 0 : index
    %c0_15 = arith.constant 0 : index
    %14 = vector.load %arg7[%c0_14, %c0_15] : memref<1x16xf32, #tpu.memory_space<vmem>>, vector<1x16xf32>
    %15 = vector.broadcast %14 : vector<1x16xf32> to vector<128x16xf32>
    %16 = arith.addf %13, %15 : vector<128x16xf32>
    %cst_16 = arith.constant 0.000000e+00 : f32
    %17 = vector.broadcast %cst_16 : f32 to vector<128x16xf32>
    %18 = arith.maximumf %16, %17 : vector<128x16xf32>
    %c0_17 = arith.constant 0 : index
    %c0_18 = arith.constant 0 : index
    %19 = vector.load %arg8[%c0_17, %c0_18] : memref<16x8xf32, #tpu.memory_space<vmem>>, vector<16x8xf32>
    %cst_19 = arith.constant dense<0.000000e+00> : vector<128x8xf32>
    %20 = tpu.matmul %18, %19, %cst_19 {dimension_numbers = #tpu.dot_dimension_numbers<[1], [0], [0], [1], [0, 0, 1, 1], [], []>} : vector<128x16xf32>, vector<16x8xf32>, vector<128x8xf32> -> vector<128x8xf32>
    %c0_20 = arith.constant 0 : index
    %c0_21 = arith.constant 0 : index
    %21 = vector.load %arg9[%c0_20, %c0_21] : memref<1x8xf32, #tpu.memory_space<vmem>>, vector<1x8xf32>
    %22 = vector.broadcast %21 : vector<1x8xf32> to vector<128x8xf32>
    %23 = arith.addf %20, %22 : vector<128x8xf32>
    %cst_22 = arith.constant 0.000000e+00 : f32
    %24 = vector.broadcast %cst_22 : f32 to vector<128x8xf32>
    %25 = arith.maximumf %23, %24 : vector<128x8xf32>
    %c0_23 = arith.constant 0 : index
    %c0_24 = arith.constant 0 : index
    %26 = vector.load %arg10[%c0_23, %c0_24] : memref<1x8xf32, #tpu.memory_space<vmem>>, vector<1x8xf32>
    %cst_25 = arith.constant dense<0.000000e+00> : vector<1x128xf32>
    %27 = tpu.matmul %26, %25, %cst_25 {dimension_numbers = #tpu.dot_dimension_numbers<[1], [1], [0], [0], [0, 0, 1, 0], [], []>} : vector<1x8xf32>, vector<128x8xf32>, vector<1x128xf32> -> vector<1x128xf32>
    %c0_26 = arith.constant 0 : index
    %c0_27 = arith.constant 0 : index
    %28 = vector.load %arg11[%c0_26, %c0_27] : memref<1x1xf32, #tpu.memory_space<vmem>>, vector<1x1xf32>
    %29 = vector.broadcast %28 : vector<1x1xf32> to vector<1x128xf32>
    %30 = arith.addf %27, %29 : vector<1x128xf32>
    %31 = arith.negf %30 : vector<1x128xf32>
    %32 = math.exp %31 : vector<1x128xf32>
    %cst_28 = arith.constant 1.000000e+00 : f32
    %33 = vector.broadcast %cst_28 : f32 to vector<1x128xf32>
    %34 = arith.addf %33, %32 : vector<1x128xf32>
    %35 = arith.divf %33, %34 : vector<1x128xf32>
    %c0_29 = arith.constant 0 : index
    %c0_30 = arith.constant 0 : index
    %36 = vector.load %arg12[%c0_29, %c0_30] : memref<1x128xf32, #tpu.memory_space<vmem>>, vector<1x128xf32>
    tpu.vector_store %arg12[%c0_29, %c0_30], %35 {strides = array<i32>} : memref<1x128xf32, #tpu.memory_space<vmem>>, vector<1x128xf32>,
    return
  }
  func.func @transform_0(%arg0: i32) -> (i32, i32) {
    %c0_i32 = arith.constant 0 : i32
    %c0_i32_0 = arith.constant 0 : i32
    return %arg0, %c0_i32 : i32, i32
  }
  func.func @transform_1(%arg0: i32) -> (i32, i32) {
    %c0_i32 = arith.constant 0 : i32
    %c0_i32_0 = arith.constant 0 : i32
    return %arg0, %c0_i32 : i32, i32
  }
  func.func @transform_2(%arg0: i32) -> (i32, i32) {
    %c0_i32 = arith.constant 0 : i32
    %c0_i32_0 = arith.constant 0 : i32
    %c0_i32_1 = arith.constant 0 : i32
    return %c0_i32, %c0_i32_0 : i32, i32
  }
  func.func @transform_3(%arg0: i32) -> (i32, i32) {
    %c0_i32 = arith.constant 0 : i32
    %c0_i32_0 = arith.constant 0 : i32
    %c0_i32_1 = arith.constant 0 : i32
    return %c0_i32, %c0_i32_0 : i32, i32
  }
  func.func @transform_4(%arg0: i32) -> (i32, i32) {
    %c0_i32 = arith.constant 0 : i32
    %c0_i32_0 = arith.constant 0 : i32
    %c0_i32_1 = arith.constant 0 : i32
    return %c0_i32, %c0_i32_0 : i32, i32
  }
  func.func @transform_5(%arg0: i32) -> (i32, i32) {
    %c0_i32 = arith.constant 0 : i32
    %c0_i32_0 = arith.constant 0 : i32
    %c0_i32_1 = arith.constant 0 : i32
    return %c0_i32, %c0_i32_0 : i32, i32
  }
  func.func @transform_6(%arg0: i32) -> (i32, i32) {
    %c0_i32 = arith.constant 0 : i32
    %c0_i32_0 = arith.constant 0 : i32
    %c0_i32_1 = arith.constant 0 : i32
    return %c0_i32, %c0_i32_0 : i32, i32
  }
  func.func @transform_7(%arg0: i32) -> (i32, i32) {
    %c0_i32 = arith.constant 0 : i32
    %c0_i32_0 = arith.constant 0 : i32
    %c0_i32_1 = arith.constant 0 : i32
    return %c0_i32, %c0_i32_0 : i32, i32
  }
  func.func @transform_8(%arg0: i32) -> (i32, i32) {
    %c0_i32 = arith.constant 0 : i32
    %c0_i32_0 = arith.constant 0 : i32
    %c0_i32_1 = arith.constant 0 : i32
    return %c0_i32, %c0_i32_0 : i32, i32
  }
  func.func @transform_9(%arg0: i32) -> (i32, i32) {
    %c0_i32 = arith.constant 0 : i32
    %c0_i32_0 = arith.constant 0 : i32
    %c0_i32_1 = arith.constant 0 : i32
    return %c0_i32, %c0_i32_0 : i32, i32
  }
  func.func @transform_10(%arg0: i32) -> (i32, i32) {
    %c0_i32 = arith.constant 0 : i32
    %c0_i32_0 = arith.constant 0 : i32
    %c0_i32_1 = arith.constant 0 : i32
    return %c0_i32, %c0_i32_0 : i32, i32
  }
  func.func @transform_11(%arg0: i32) -> (i32, i32) {
    %c0_i32 = arith.constant 0 : i32
    %c0_i32_0 = arith.constant 0 : i32
    return %c0_i32, %arg0 : i32, i32
  }
}

</mosaic_0001>

<bundles_post_ra>
// kernel: tpu_custom_call.1
= control target key start
LH: loop header
LB: loop body
LE: loop exit
PB: predicated region body
PF: predicated region fallthrough
CT: control target
= control target key end

     0   :  { %s1902_s0 = inlined_call_operand.vmem [shape: f32[128,32], index: 0, kind: input, shape index: {}]   ;;  %s1903_s1 = inlined_call_operand.vmem [shape: f32[128,32], index: 1, kind: input, shape index: {}]   ;;  %s1904_s2 = inlined_call_operand.vmem [shape: f32[32,32], index: 2, kind: input, shape index: {}]   ;;  %s1905_s3 = inlined_call_operand.vmem [shape: f32[32,32], index: 3, kind: input, shape index: {}]   ;;  %s1906_s4 = inlined_call_operand.vmem [shape: f32[1,32], index: 4, kind: input, shape index: {}]   ;;  %s1907_s5 = inlined_call_operand.vmem [shape: f32[32,16], index: 5, kind: input, shape index: {}]   ;;  %s1908_s6 = inlined_call_operand.vmem [shape: f32[1,16], index: 6, kind: input, shape index: {}]   ;;  %s1909_s7 = inlined_call_operand.vmem [shape: f32[16,8], index: 7, kind: input, shape index: {}]   ;;  %s1910_s8 = inlined_call_operand.vmem [shape: f32[1,8], index: 8, kind: input, shape index: {}]   ;;  %s1911_s9 = inlined_call_operand.vmem [shape: f32[1,8], index: 9, kind: input, shape index: {}]   ;;  %s1912_s10 = inlined_call_operand.<no memory space> [shape: f32[1,1], index: 10, kind: input, shape index: {}]   ;;  %s1913_s11 = inlined_call_operand.hbm [shape: f32[1,128], index: 11, kind: output, shape index: {}]  }
   0x1   :  { %v16_v0 = vstv %s1912_s10 }
   0x2   :  { %17 = vst [vmem:[#allocation2] sm:$0x1] %v16_v0 }
   0x3   :  { %v77_v1 = vld [vmem:[%s1905_s3] sm:$0xff]  ;;  %v78_v2 = vld [vmem:[%s1905_s3 + $0x8] sm:$0xff]  ;;  %v79_v3 = vld [vmem:[%s1905_s3 + $0x10] sm:$0xff]  ;;  %vm81_vm0 = vcmask 261120  }
   0x4   :  { %v1439_v4 = vpack.c.bf16 %v78_v2, %v77_v1  ;;  %v80_v5 = vld [vmem:[%s1905_s3 + $0x18] sm:$0xff]  ;;  %v57_v6 = vld [vmem:[%s1903_s1] sm:$0xff]  ;;  %v74_v9 = vld [vmem:[%s1904_s2 + $0x8] sm:$0xff] }
   0x5   :  { %v1443_v7 = vpack.c.bf16 %v80_v5, %v79_v3  ;;  %1288 = vmatprep.mubr.msk.f32.mxu0 %vm81_vm0, %v57_v6  ;;  %v73_v8 = vld [vmem:[%s1904_s2] sm:$0xff]  ;;  %v75_v11 = vld [vmem:[%s1904_s2 + $0x10] sm:$0xff]  ;;  %v76_v12 = vld [vmem:[%s1904_s2 + $0x18] sm:$0xff] }
   0x6   :  { %1440 = vmatprep.subr.bf16.mxu0 %v1439_v4  ;;  %1499 = vmatprep.subr.bf16.mxu1 %v1439_v4  ;;  %v1447_v10 = vpack.c.bf16 %v74_v9, %v73_v8  ;;  %v58_v13 = vld [vmem:[%s1903_s1 + $0x8] sm:$0xff]  ;;  %v65_v14 = vld [vmem:[%s1903_s1 + $0x40] sm:$0xff]  ;;  %v59_v16 = vld [vmem:[%s1903_s1 + $0x10] sm:$0xff]  ;;  %v1451_v17 = vpack.c.bf16 %v76_v12, %v75_v11 }
   0x7   :  { %1442 = vmatpush3.bf16.msra.mxu0 %v1439_v4  ;;  %1501 = vmatpush3.bf16.msra.mxu1 %v1439_v4  ;;  %v66_v15 = vld [vmem:[%s1903_s1 + $0x48] sm:$0xff]  ;;  %v67_v18 = vld [vmem:[%s1903_s1 + $0x50] sm:$0xff]  ;;  %v60_v19 = vld [vmem:[%s1903_s1 + $0x18] sm:$0xff] }
   0x8   :  { %1444 = vmatprep.subr.bf16.mxu0 %v1443_v7  ;;  %1500 = vmatprep.subr.bf16.mxu1 %v1443_v7  ;;  %v61_v20 = vld [vmem:[%s1903_s1 + $0x20] sm:$0xff]  ;;  %v68_v21 = vld [vmem:[%s1903_s1 + $0x58] sm:$0xff]  ;;  %v508_v24 = vld [vmem:[%s1907_s5 + $0x8] sm:$0xff] }
   0x9   :  { %1300 = vmatprep.mubr.msk.f32.mxu1 %vm81_vm0, %v65_v14  ;;  %v69_v22 = vld [vmem:[%s1903_s1 + $0x60] sm:$0xff]  ;;  %v509_v26 = vld [vmem:[%s1907_s5 + $0x10] sm:$0xff]  ;;  %v510_v27 = vld [vmem:[%s1907_s5 + $0x18] sm:$0xff] }
   0xa   :  { %v507_v23 = vld [vmem:[%s1907_s5] sm:$0xff] }
   0xb   :  { %1446 = vmatpush3.bf16.msra.mxu0 %v1443_v7  ;;  %1502 = vmatpush3.bf16.msra.mxu1 %v1443_v7  ;;  %v1455_v25 = vpack.c.bf16 %v508_v24, %v507_v23 }
   0xc   :  { %1448 = vmatprep.subr.bf16.mxu0 %v1447_v10 }
   0xe   :  { %1289 = vmatmul.mubr.msk.f32.vlgmr.msra.gmra.mrb[0].mxu0 %vm81_vm0, %v58_v13  ;;  %1301 = vmatmul.mubr.msk.f32.vlgmr.msra.gmra.mrb[0].mxu1 %vm81_vm0, %v66_v15 }
   0xf   :  { %1450 = vmatpush3.bf16.msra.mxu0 %v1447_v10  ;;  %1291 = vmatprep.mubr.msk.f32.mxu0 %vm81_vm0, %v59_v16 }
  0x10   :  { %1452 = vmatprep.subr.bf16.mxu0 %v1451_v17  ;;  %1303 = vmatprep.mubr.msk.f32.mxu1 %vm81_vm0, %v67_v18 }
  0x11   :  { %18 = vsyncpa [#allocation4], 0  ;;  %v62_v28 = vld [vmem:[%s1903_s1 + $0x28] sm:$0xff]  ;;  %v63_v30 = vld [vmem:[%s1903_s1 + $0x30] sm:$0xff]  ;;  %1456 = vmatprep.subr.bf16.mxu1 %v1455_v25  ;;  %v1459_v32 = vpack.c.bf16 %v510_v27, %v509_v26  ;;  %vm736_vm1 = vcmask 130048   ;;  %vm1554_vm2 = vmmov 0  }
  0x12   :  { %1292 = vmatmul.mubr.msk.f32.gmra.mrb[2].mxu0 %vm81_vm0, %v60_v19  ;;  %1304 = vmatmul.mubr.msk.f32.gmra.mrb[2].mxu1 %vm81_vm0, %v68_v21  ;;  %v70_v29 = vld [vmem:[%s1903_s1 + $0x68] sm:$0xff]  ;;  %v71_v31 = vld [vmem:[%s1903_s1 + $0x70] sm:$0xff]  ;;  %v64_v33 = vld [vmem:[%s1903_s1 + $0x38] sm:$0xff]  ;;  %vm957_vm3 = vcmask 64512   ;;  %s1557_s23 = smov [#allocation3]  }
  0x13   :  { %1294 = vmatprep.mubr.msk.f32.mxu0 %vm81_vm0, %v61_v20  ;;  %1454 = vmatpush3.bf16.msra.mxu0 %v1451_v17  ;;  %v72_v34 = vld [vmem:[%s1903_s1 + $0x78] sm:$0xff]  ;;  %v41_v35 = vld [vmem:[%s1902_s0] sm:$0xff]  ;;  %v42_v36 = vld [vmem:[%s1902_s0 + $0x8] sm:$0xff]  ;;  %s1092_s2 = sshll.u32 %s1557_s23, 4  ;;  %s1093_s2 = int_to_ptr.vmem [resolvable:$true] %s1092_s2 }
  0x14   :  { %1306 = vmatprep.mubr.msk.f32.mxu1 %vm81_vm0, %v69_v22  ;;  %1458 = vmatpush3.bf16.msra.mxu1 %v1455_v25  ;;  %v43_v37 = vld [vmem:[%s1902_s0 + $0x10] sm:$0xff]  ;;  %v44_v38 = vld [vmem:[%s1902_s0 + $0x18] sm:$0xff]  ;;  %v45_v39 = vld [vmem:[%s1902_s0 + $0x20] sm:$0xff]  ;;  %s1533_s24 = scalar_lea.vmem %s1093_s2, 32  ;;  %p1534_p1 = scmp.lt.s32.totalorder %s1093_s2, %s1093_s2 }
  0x15   :  { %1460 = vmatprep.subr.bf16.mxu1 %v1459_v32  ;;  %v46_v40 = vld [vmem:[%s1902_s0 + $0x28] sm:$0xff]  ;;  %v47_v41 = vld [vmem:[%s1902_s0 + $0x30] sm:$0xff]  ;;  %v48_v42 = vld [vmem:[%s1902_s0 + $0x38] sm:$0xff] }
  0x16   :  { %1295 = vmatmul.mubr.msk.f32.gmra.mrb[4].mxu0 %vm81_vm0, %v62_v28  ;;  %1307 = vmatmul.mubr.msk.f32.gmra.mrb[4].mxu1 %vm81_vm0, %v70_v29  ;;  %v49_v43 = vld [vmem:[%s1902_s0 + $0x40] sm:$0xff]  ;;  %v50_v44 = vld [vmem:[%s1902_s0 + $0x48] sm:$0xff]  ;;  %v51_v45 = vld [vmem:[%s1902_s0 + $0x50] sm:$0xff] }
  0x17   :  { %1297 = vmatprep.mubr.msk.f32.mxu0 %vm81_vm0, %v63_v30  ;;  %1309 = vmatprep.mubr.msk.f32.mxu1 %vm81_vm0, %v71_v31  ;;  %v52_v46 = vld [vmem:[%s1902_s0 + $0x58] sm:$0xff]  ;;  %v53_v47 = vld [vmem:[%s1902_s0 + $0x60] sm:$0xff]  ;;  %v54_v48 = vld [vmem:[%s1902_s0 + $0x68] sm:$0xff] }
  0x18   :  { %1462 = vmatpush3.bf16.msra.mxu1 %v1459_v32  ;;  %v55_v49 = vld [vmem:[%s1902_s0 + $0x70] sm:$0xff]  ;;  %v56_v50 = vld [vmem:[%s1902_s0 + $0x78] sm:$0xff]  ;;  %v727_v51 = vld [vmem:[%s1909_s7] sm:$0xff] }
  0x19   :  { %v728_v52 = vld [vmem:[%s1909_s7 + $0x8] sm:$0xff]  ;;  %v1798_v62 = vld [vmem:[%s1906_s4] ss:$0 sm:$0xff]  ;;  %vm1859_vm4 = vmpackc.low %vm957_vm3, %vm957_vm3 }
  0x1a   :  { %1298 = vmatmul.mubr.msk.f32.gmra.mrb[6].mxu0 %vm81_vm0, %v64_v33  ;;  %1310 = vmatmul.mubr.msk.f32.gmra.mrb[6].mxu1 %vm81_vm0, %v72_v34  ;;  %v1463_v53 = vpack.c.bf16 %v728_v52, %v727_v51 }
  0x1b   :  { %1320 = vmatprep.mubr.msk.f32.mxu0 %vm81_vm0, %v41_v35 }
  0x1c   :  { %1464 = vmatprep.subr.bf16.mxu1 %v1463_v53 }
  0x1e   :  { %1321 = vmatmul.mubr.msk.f32.vlgmr.msra.gmra.mrb[0].mxu0 %vm81_vm0, %v42_v36 }
  0x1f   :  { %1323 = vmatprep.mubr.msk.f32.mxu0 %vm81_vm0, %v43_v37 }
  0x22   :  { %1324 = vmatmul.mubr.msk.f32.gmra.mrb[2].mxu0 %vm81_vm0, %v44_v38 }
  0x23   :  { %1326 = vmatprep.mubr.msk.f32.mxu0 %vm81_vm0, %v45_v39 }
  0x26   :  { %1327 = vmatmul.mubr.msk.f32.gmra.mrb[4].mxu0 %vm81_vm0, %v46_v40 }
  0x27   :  { %1329 = vmatprep.mubr.msk.f32.mxu0 %vm81_vm0, %v47_v41 }
  0x2a   :  { %1330 = vmatmul.mubr.msk.f32.gmra.mrb[6].mxu0 %vm81_vm0, %v48_v42 }
  0x2b   :  { %1332 = vmatprep.mubr.msk.f32.mxu0 %vm81_vm0, %v49_v43 }
  0x2e   :  { %1333 = vmatmul.mubr.msk.f32.gmra.mrb[8].mxu0 %vm81_vm0, %v50_v44 }
  0x2f   :  { %1335 = vmatprep.mubr.msk.f32.mxu0 %vm81_vm0, %v51_v45 }
  0x32   :  { %1336 = vmatmul.mubr.msk.f32.gmra.mrb[10].mxu0 %vm81_vm0, %v52_v46 }
  0x33   :  { %1338 = vmatprep.mubr.msk.f32.mxu0 %vm81_vm0, %v53_v47 }
  0x36   :  { %1339 = vmatmul.mubr.msk.f32.gmra.mrb[12].mxu0 %vm81_vm0, %v54_v48 }
  0x37   :  { %1341 = vmatprep.mubr.msk.f32.mxu0 %vm81_vm0, %v55_v49 }
  0x3a   :  { %1342 = vmatmul.mubr.msk.f32.gmra.mrb[14].mxu0 %vm81_vm0, %v56_v50 }
  0xe1   :  { %v1302_v54 = vpop.f32.mrb[0].mxu1 }
  0xe2   :  { %v236_v55 = vpop.f32.mrb[1].mxu1 }
  0xe5   :  { %v1305_v56 = vpop.f32.mrb[2].mxu1 }
  0xe6   :  { %v246_v57 = vpop.f32.mrb[3].mxu1 }
  0xe9   :  { %v1308_v58 = vpop.f32.mrb[4].mxu1 }
  0xea   :  { %v256_v59 = vpop.f32.mrb[5].mxu1 }
  0xed   :  { %v1791_v60 = vpop.f32.mrb[6].mxu1 }
  0xee   :  { %v1793_v61 = vpop.f32.mrb[7].mxu1 }
  0xf1   :  { %v1322_v63 = vpop.f32.mrb[0].mxu0 }
  0xf2   :  { %v476_v0 = vadd.f32 %v1322_v63, %v1798_v62  ;;  %v389_v1 = vpop.f32.mrb[1].mxu0 }
  0xf3   :  { %v475_v2 = vadd.f32 %v1798_v62, %v389_v1 }
  0xf4   :  { %v492_v5 = vmax.f32 %v476_v0, 0.0 }
  0xf5   :  { %v491_v3 = vmax.f32 %v475_v2, 0.0  ;;  %v1325_v4 = vpop.f32.mrb[2].mxu0 }
  0xf6   :  { %v478_v6 = vadd.f32 %v1325_v4, %v1798_v62  ;;  %v399_v7 = vpop.f32.mrb[3].mxu0 }
  0xf7   :  { %v477_v8 = vadd.f32 %v1798_v62, %v399_v7  ;;  %1352 = vmatprep.mubr.msk.f32.mxu1 %vm81_vm0, %v491_v3 }
  0xf8   :  { %1353 = vmatmul.mubr.msk.f32.vlgmr.msra.gmra.mrb[8].mxu1 %vm81_vm0, %v492_v5  ;;  %v494_v11 = vmax.f32 %v478_v6, 0.0 }
  0xf9   :  { %v493_v9 = vmax.f32 %v477_v8, 0.0  ;;  %v1328_v10 = vpop.f32.mrb[4].mxu0  ;;  %1466 = vmatpush3.bf16.msra.mxu1 %v1463_v53 }
  0xfa   :  { %v480_v12 = vadd.f32 %v1328_v10, %v1798_v62  ;;  %v409_v13 = vpop.f32.mrb[5].mxu0 }
  0xfb   :  { %v479_v14 = vadd.f32 %v1798_v62, %v409_v13  ;;  %1355 = vmatprep.mubr.msk.f32.mxu1 %vm81_vm0, %v493_v9 }
  0xfc   :  { %1356 = vmatmul.mubr.msk.f32.gmra.mrb[10].mxu1 %vm81_vm0, %v494_v11  ;;  %v496_v17 = vmax.f32 %v480_v12, 0.0 }
  0xfd   :  { %v495_v15 = vmax.f32 %v479_v14, 0.0  ;;  %v1331_v16 = vpop.f32.mrb[6].mxu0 }
  0xfe   :  { %v482_v18 = vadd.f32 %v1331_v16, %v1798_v62  ;;  %v419_v19 = vpop.f32.mrb[7].mxu0 }
  0xff   :  { %v481_v20 = vadd.f32 %v1798_v62, %v419_v19  ;;  %1358 = vmatprep.mubr.msk.f32.mxu1 %vm81_vm0, %v495_v15 }
 0x100   :  { %1359 = vmatmul.mubr.msk.f32.gmra.mrb[12].mxu1 %vm81_vm0, %v496_v17  ;;  %v498_v23 = vmax.f32 %v482_v18, 0.0 }
 0x101   :  { %v497_v21 = vmax.f32 %v481_v20, 0.0  ;;  %v1334_v22 = vpop.f32.mrb[8].mxu0 }
 0x102   :  { %v435_v24 = vadd.f32 %v1334_v22, %v1302_v54  ;;  %v429_v25 = vpop.f32.mrb[9].mxu0 }
 0x103   :  { %1361 = vmatprep.mubr.msk.f32.mxu1 %vm81_vm0, %v497_v21  ;;  %v430_v26 = vadd.f32 %v429_v25, %v236_v55  ;;  %v1133_v55 = vld [vmem:[%s1908_s6] ss:$0 sm:$0xff] }
 0x104   :  { %1362 = vmatmul.mubr.msk.f32.gmra.mrb[14].mxu1 %vm81_vm0, %v498_v23  ;;  %v484_v27 = vadd.f32 %v1798_v62, %v435_v24 }
 0x105   :  { %v483_v28 = vadd.f32 %v1798_v62, %v430_v26  ;;  %v1337_v29 = vpop.f32.mrb[10].mxu0 }
 0x106   :  { %v500_v30 = vmax.f32 %v484_v27, 0.0  ;;  %v445_v31 = vadd.f32 %v1337_v29, %v1305_v56  ;;  %v439_v32 = vpop.f32.mrb[11].mxu0 }
 0x107   :  { %v499_v33 = vmax.f32 %v483_v28, 0.0  ;;  %v440_v34 = vadd.f32 %v439_v32, %v246_v57 }
 0x108   :  { %v486_v35 = vadd.f32 %v1798_v62, %v445_v31 }
 0x109   :  { %1364 = vmatprep.mubr.msk.f32.mxu1 %vm81_vm0, %v499_v33  ;;  %v485_v36 = vadd.f32 %v1798_v62, %v440_v34  ;;  %v1340_v37 = vpop.f32.mrb[12].mxu0 }
 0x10a   :  { %v502_v38 = vmax.f32 %v486_v35, 0.0  ;;  %1365 = vmatmul.mubr.msk.f32.gmra.mrb[16].mxu1 %vm81_vm0, %v500_v30  ;;  %v455_v39 = vadd.f32 %v1340_v37, %v1308_v58  ;;  %v449_v40 = vpop.f32.mrb[13].mxu0 }
 0x10b   :  { %v501_v41 = vmax.f32 %v485_v36, 0.0  ;;  %v450_v42 = vadd.f32 %v449_v40, %v256_v59  ;;  %v1553_v40 = vmov 0.0|0.0  }
 0x10c   :  { %v488_v43 = vadd.f32 %v1798_v62, %v455_v39  ;;  %1467 = vmatprep.subr.bf16.mxu0 %v1553_v40 }
 0x10d   :  { %1367 = vmatprep.mubr.msk.f32.mxu1 %vm81_vm0, %v501_v41  ;;  %v487_v44 = vadd.f32 %v1798_v62, %v450_v42  ;;  %v1343_v45 = vpop.f32.mrb[14].mxu0  ;;  %v1555_v41 = vmov 0.0   ;;  %v947_v42 = vld [vmem:[#allocation2] sm:$0x1] }
 0x10e   :  { %v504_v46 = vmax.f32 %v488_v43, 0.0  ;;  %1368 = vmatmul.mubr.msk.f32.gmra.mrb[18].mxu1 %vm81_vm0, %v502_v38  ;;  %v465_v47 = vadd.f32 %v1343_v45, %v1791_v60  ;;  %v459_v48 = vpop.f32.mrb[15].mxu0  ;;  %1436 = vmatprep.mubr.msk.f32.mxu0 %vm1554_vm2, %v1555_v41  ;;  %v1556_v43 = vmov 0  }
 0x10f   :  { %v503_v49 = vmax.f32 %v487_v44, 0.0  ;;  %v460_v50 = vadd.f32 %v459_v48, %v1793_v61  ;;  %1524 = vset.pattern.permute.xlu0 %v1556_v43  ;;  %v1150_v44 = vld [vmem:[%s1910_s8] ss:$0 sm:$0xff] }
 0x110   :  { %v490_v51 = vadd.f32 %v1798_v62, %v465_v47  ;;  %950 = vperm.xlu0 %1524, %v947_v42  }
 0x111   :  { %1370 = vmatprep.mubr.msk.f32.mxu1 %vm81_vm0, %v503_v49  ;;  %v489_v52 = vadd.f32 %v1798_v62, %v460_v50 }
 0x112   :  { %v506_v53 = vmax.f32 %v490_v51, 0.0  ;;  %1371 = vmatmul.mubr.msk.f32.gmra.mrb[20].mxu1 %vm81_vm0, %v504_v46 }
 0x113   :  { %v505_v54 = vmax.f32 %v489_v52, 0.0 }
 0x115   :  { %1373 = vmatprep.mubr.msk.f32.mxu1 %vm81_vm0, %v505_v54 }
 0x116   :  { %1374 = vmatmul.mubr.msk.f32.gmra.mrb[22].mxu1 %vm81_vm0, %v506_v53 }
 0x18f   :  { %v951_v43 = vpop.permute.xlu0 %950 }
 0x1cb   :  { %v1354_v56 = vpop.f32.mrb[8].mxu1 }
 0x1cc   :  { %v638_v57 = vadd.f32 %v1354_v56, %v1133_v55  ;;  %v632_v58 = vpop.f32.mrb[9].mxu1 }
 0x1cd   :  { %v633_v59 = vadd.f32 %v1133_v55, %v632_v58 }
 0x1ce   :  { %v712_v62 = vmax.f32 %v638_v57, 0.0 }
 0x1cf   :  { %v711_v60 = vmax.f32 %v633_v59, 0.0  ;;  %v1357_v61 = vpop.f32.mrb[10].mxu1 }
 0x1d0   :  { %v648_v63 = vadd.f32 %v1357_v61, %v1133_v55  ;;  %v642_v0 = vpop.f32.mrb[11].mxu1 }
 0x1d1   :  { %v643_v1 = vadd.f32 %v1133_v55, %v642_v0  ;;  %1380 = vmatprep.mubr.msk.f32.mxu1 %vm736_vm1, %v711_v60 }
 0x1d2   :  { %1381 = vmatmul.mubr.msk.f32.vlgmr.msra.gmra.mrb[24].mxu1 %vm736_vm1, %v712_v62  ;;  %v714_v4 = vmax.f32 %v648_v63, 0.0 }
 0x1d3   :  { %v713_v2 = vmax.f32 %v643_v1, 0.0  ;;  %v1360_v3 = vpop.f32.mrb[12].mxu1 }
 0x1d4   :  { %v658_v5 = vadd.f32 %v1360_v3, %v1133_v55  ;;  %v652_v6 = vpop.f32.mrb[13].mxu1 }
 0x1d5   :  { %v653_v7 = vadd.f32 %v1133_v55, %v652_v6  ;;  %1383 = vmatprep.mubr.msk.f32.mxu1 %vm736_vm1, %v713_v2 }
 0x1d6   :  { %1384 = vmatmul.mubr.msk.f32.gmra.mrb[26].mxu1 %vm736_vm1, %v714_v4  ;;  %v716_v10 = vmax.f32 %v658_v5, 0.0 }
 0x1d7   :  { %v715_v8 = vmax.f32 %v653_v7, 0.0  ;;  %v1363_v9 = vpop.f32.mrb[14].mxu1 }
 0x1d8   :  { %v668_v11 = vadd.f32 %v1363_v9, %v1133_v55  ;;  %v662_v12 = vpop.f32.mrb[15].mxu1 }
 0x1d9   :  { %v663_v13 = vadd.f32 %v1133_v55, %v662_v12  ;;  %1386 = vmatprep.mubr.msk.f32.mxu1 %vm736_vm1, %v715_v8 }
 0x1da   :  { %1387 = vmatmul.mubr.msk.f32.gmra.mrb[28].mxu1 %vm736_vm1, %v716_v10  ;;  %v718_v15 = vmax.f32 %v668_v11, 0.0 }
 0x1db   :  { %v717_v14 = vmax.f32 %v663_v13, 0.0 }
 0x1dd   :  { %1389 = vmatprep.mubr.msk.f32.mxu1 %vm736_vm1, %v717_v14  ;;  %v1366_v16 = vpop.f32.mrb[16].mxu1 }
 0x1de   :  { %1390 = vmatmul.mubr.msk.f32.gmra.mrb[30].mxu1 %vm736_vm1, %v718_v15  ;;  %v678_v17 = vadd.f32 %v1366_v16, %v1133_v55  ;;  %v672_v18 = vpop.f32.mrb[17].mxu1 }
 0x1df   :  { %v673_v19 = vadd.f32 %v1133_v55, %v672_v18 }
 0x1e0   :  { %v720_v20 = vmax.f32 %v678_v17, 0.0 }
 0x1e1   :  { %v719_v21 = vmax.f32 %v673_v19, 0.0  ;;  %v1369_v22 = vpop.f32.mrb[18].mxu1 }
 0x1e2   :  { %v688_v23 = vadd.f32 %v1369_v22, %v1133_v55  ;;  %v682_v24 = vpop.f32.mrb[19].mxu1 }
 0x1e3   :  { %1392 = vmatprep.mubr.msk.f32.mxu1 %vm736_vm1, %v719_v21  ;;  %v683_v25 = vadd.f32 %v1133_v55, %v682_v24 }
 0x1e4   :  { %1393 = vmatmul.mubr.msk.f32.gmra.mrb[32].mxu1 %vm736_vm1, %v720_v20  ;;  %v722_v26 = vmax.f32 %v688_v23, 0.0 }
 0x1e5   :  { %v721_v27 = vmax.f32 %v683_v25, 0.0  ;;  %v1372_v28 = vpop.f32.mrb[20].mxu1 }
 0x1e6   :  { %v698_v29 = vadd.f32 %v1372_v28, %v1133_v55  ;;  %v692_v30 = vpop.f32.mrb[21].mxu1 }
 0x1e7   :  { %1395 = vmatprep.mubr.msk.f32.mxu1 %vm736_vm1, %v721_v27  ;;  %v693_v31 = vadd.f32 %v1133_v55, %v692_v30 }
 0x1e8   :  { %1396 = vmatmul.mubr.msk.f32.gmra.mrb[34].mxu1 %vm736_vm1, %v722_v26  ;;  %v724_v32 = vmax.f32 %v698_v29, 0.0 }
 0x1e9   :  { %v723_v33 = vmax.f32 %v693_v31, 0.0  ;;  %v1375_v34 = vpop.f32.mrb[22].mxu1 }
 0x1ea   :  { %v708_v35 = vadd.f32 %v1375_v34, %v1133_v55  ;;  %v702_v36 = vpop.f32.mrb[23].mxu1 }
 0x1eb   :  { %1398 = vmatprep.mubr.msk.f32.mxu1 %vm736_vm1, %v723_v33  ;;  %v703_v37 = vadd.f32 %v1133_v55, %v702_v36 }
 0x1ec   :  { %1399 = vmatmul.mubr.msk.f32.gmra.mrb[36].mxu1 %vm736_vm1, %v724_v32  ;;  %v726_v38 = vmax.f32 %v708_v35, 0.0 }
 0x1ed   :  { %v725_v39 = vmax.f32 %v703_v37, 0.0 }
 0x1ef   :  { %1401 = vmatprep.mubr.msk.f32.mxu1 %vm736_vm1, %v725_v39  ;;  %v953_v39 = vlaneseq }
 0x1f0   :  { %1402 = vmatmul.mubr.msk.f32.gmra.mrb[38].mxu1 %vm736_vm1, %v726_v38  ;;  %v946_v38 = vld [vmem:[%s1911_s9] sm:$0x1]  ;;  %s1529_s9 = scalar_lea.vmem %s1093_s2, 16 }
 0x1f1   :  { %v954_v41 = vshrl.u32 %v953_v39, 7  ;;  %p1530_p0 = scmp.ne.s32.totalorder %s1093_s2, %s1529_s9  ;;  %p1535_p2 = scmp.lt.s32.totalorder %s1533_s24, %s1529_s9 }
 0x1f3   :  { %v955_v42 = vsub.s32 0, %v954_v41  ;;  %p1536_p3 = por %p1535_p2, %p1534_p1 }
 0x1f5   :  { %p1537_p4 = pnand %p1536_p3, %p1530_p0 }
 0x2a5   :  { %v1382_v45 = vpop.f32.mrb[24].mxu1 }
 0x2a6   :  { %v857_v46 = vadd.f32 %v1382_v45, %v1150_v44  ;;  %v851_v47 = vpop.f32.mrb[25].mxu1 }
 0x2a7   :  { %v852_v48 = vadd.f32 %v1150_v44, %v851_v47 }
 0x2a8   :  { %v931_v49 = vmax.f32 %v857_v46, 0.0 }
 0x2a9   :  { %v930_v50 = vmax.f32 %v852_v48, 0.0  ;;  %v1385_v51 = vpop.f32.mrb[26].mxu1 }
 0x2aa   :  { %v867_v52 = vadd.f32 %v1385_v51, %v1150_v44  ;;  %v861_v53 = vpop.f32.mrb[27].mxu1 }
 0x2ab   :  { %v1468_v55 = vpack.c.bf16 %v931_v49, %v930_v50  ;;  %v862_v56 = vadd.f32 %v1150_v44, %v861_v53 }
 0x2ac   :  { %v933_v57 = vmax.f32 %v867_v52, 0.0 }
 0x2ad   :  { %v932_v58 = vmax.f32 %v862_v56, 0.0  ;;  %v1388_v59 = vpop.f32.mrb[28].mxu1  ;;  %1470 = vmatpush3.bf16.xpose.msk.msra.mxu0 %vm1859_vm4, %v1468_v55 }
 0x2ae   :  { %v877_v60 = vadd.f32 %v1388_v59, %v1150_v44  ;;  %v871_v61 = vpop.f32.mrb[29].mxu1  ;;  %1471 = vmatprep.subr.bf16.mxu0 %v1553_v40 }
 0x2af   :  { %v1472_v62 = vpack.c.bf16 %v933_v57, %v932_v58  ;;  %v872_v63 = vadd.f32 %v1150_v44, %v871_v61 }
 0x2b0   :  { %v935_v0 = vmax.f32 %v877_v60, 0.0 }
 0x2b1   :  { %v934_v1 = vmax.f32 %v872_v63, 0.0  ;;  %v1391_v2 = vpop.f32.mrb[30].mxu1 }
 0x2b2   :  { %v887_v3 = vadd.f32 %v1391_v2, %v1150_v44  ;;  %v881_v4 = vpop.f32.mrb[31].mxu1 }
 0x2b3   :  { %v1476_v5 = vpack.c.bf16 %v935_v0, %v934_v1  ;;  %v882_v6 = vadd.f32 %v1150_v44, %v881_v4 }
 0x2b4   :  { %v937_v7 = vmax.f32 %v887_v3, 0.0 }
 0x2b5   :  { %v936_v8 = vmax.f32 %v882_v6, 0.0  ;;  %1474 = vmatpush3.bf16.xpose.msk.msra.mxu0 %vm1859_vm4, %v1472_v62 }
 0x2b6   :  { %1475 = vmatprep.subr.bf16.mxu0 %v1553_v40 }
 0x2b7   :  { %v1480_v9 = vpack.c.bf16 %v937_v7, %v936_v8  ;;  %v1394_v10 = vpop.f32.mrb[32].mxu1 }
 0x2b8   :  { %v897_v11 = vadd.f32 %v1394_v10, %v1150_v44  ;;  %v891_v12 = vpop.f32.mrb[33].mxu1 }
 0x2b9   :  { %v892_v13 = vadd.f32 %v1150_v44, %v891_v12 }
 0x2ba   :  { %v939_v14 = vmax.f32 %v897_v11, 0.0 }
 0x2bb   :  { %v938_v15 = vmax.f32 %v892_v13, 0.0  ;;  %v1397_v16 = vpop.f32.mrb[34].mxu1 }
 0x2bc   :  { %v907_v17 = vadd.f32 %v1397_v16, %v1150_v44  ;;  %v901_v18 = vpop.f32.mrb[35].mxu1 }
 0x2bd   :  { %1478 = vmatpush3.bf16.xpose.msk.msra.mxu0 %vm1859_vm4, %v1476_v5  ;;  %v1484_v19 = vpack.c.bf16 %v939_v14, %v938_v15  ;;  %v902_v20 = vadd.f32 %v1150_v44, %v901_v18 }
 0x2be   :  { %1479 = vmatprep.subr.bf16.mxu0 %v1553_v40  ;;  %v941_v21 = vmax.f32 %v907_v17, 0.0 }
 0x2bf   :  { %v940_v22 = vmax.f32 %v902_v20, 0.0  ;;  %v1400_v23 = vpop.f32.mrb[36].mxu1 }
 0x2c0   :  { %v917_v24 = vadd.f32 %v1400_v23, %v1150_v44  ;;  %v911_v25 = vpop.f32.mrb[37].mxu1 }
 0x2c1   :  { %v1488_v26 = vpack.c.bf16 %v941_v21, %v940_v22  ;;  %v912_v27 = vadd.f32 %v1150_v44, %v911_v25 }
 0x2c2   :  { %v943_v28 = vmax.f32 %v917_v24, 0.0 }
 0x2c3   :  { %v942_v29 = vmax.f32 %v912_v27, 0.0  ;;  %v1403_v30 = vpop.f32.mrb[38].mxu1 }
 0x2c4   :  { %v927_v31 = vadd.f32 %v1403_v30, %v1150_v44  ;;  %v921_v32 = vpop.f32.mrb[39].mxu1 }
 0x2c5   :  { %1482 = vmatpush3.bf16.xpose.msk.msra.mxu0 %vm1859_vm4, %v1480_v9  ;;  %v1492_v33 = vpack.c.bf16 %v943_v28, %v942_v29  ;;  %v922_v34 = vadd.f32 %v1150_v44, %v921_v32  ;;  %v956_v44 = vrot.slane %v951_v43, %v955_v42 }
 0x2c6   :  { %1483 = vmatprep.subr.bf16.mxu0 %v1553_v40  ;;  %v945_v35 = vmax.f32 %v927_v31, 0.0 }
 0x2c7   :  { %v944_v36 = vmax.f32 %v922_v34, 0.0 }
 0x2c9   :  { %v1496_v37 = vpack.c.bf16 %v945_v35, %v944_v36 }
 0x2cd   :  { %1486 = vmatpush3.bf16.xpose.msk.msra.mxu0 %vm1859_vm4, %v1484_v19 }
 0x2ce   :  { %1487 = vmatprep.subr.bf16.mxu0 %v1553_v40 }
 0x2d5   :  { %1490 = vmatpush3.bf16.xpose.msk.msra.mxu0 %vm1859_vm4, %v1488_v26 }
 0x2d6   :  { %1491 = vmatprep.subr.bf16.mxu0 %v1553_v40 }
 0x2dd   :  { %1494 = vmatpush3.bf16.xpose.msk.msra.mxu0 %vm1859_vm4, %v1492_v33 }
 0x2de   :  { %1495 = vmatprep.subr.bf16.mxu0 %v1553_v40 }
 0x2e5   :  { %1498 = vmatpush3.bf16.xpose.msk.msra.mxu0 %vm1859_vm4, %v1496_v37 }
 0x2ec   :  { %1437 = vmatmul.mubr.msk.f32.vlgmr.msra.gmra.mrb[16].mxu0 %vm957_vm3, %v946_v38 }
 0x3bf   :  { %v1075_v45 = vpop.f32.mrb[16].mxu0 }
 0x3c0   :  { %v1076_v46 = vadd.f32 %v1075_v45, %v956_v44  ;;  %v1438_v47 = vpop.f32.mrb[17].mxu0 }
 0x3c2   :  { %v1184_v48 = vmul.f32 -1.442695, %v1076_v46 }
 0x3c4   :  { %1525 = vpow2.f32 %v1184_v48 }
 0x3ce   :  { %v1526_v40 = vpop.eup %1525 }
 0x3cf   :  { %v1082_v49 = vadd.f32 1.0, %v1526_v40 }
 0x3d1   :  { %1527 = vrcp.f32 %v1082_v49 }
 0x3db   :  { %v1528_v50 = vpop.eup %1527 }
 0x3dc   :  { %1085 = vst [vmem:[#allocation3] sm:$0x1] %v1528_v50 }
 0x3dd   :  { %1540 = shalt.err (!%p1537_p4)
}
 0x3de   :  { %s1541_s26 = scalar_lea.hbm %s1913_s11, 16 }
 0x3df   :  { %p1542_p5 = scmp.ne.s32.totalorder %s1913_s11, %s1541_s26  ;;  %p1545_p6 = scmp.lt.u32.totalorder %s1541_s26, %s1913_s11 }
 0x3e1   :  { %p1547_p7 = pnand %p1545_p6, %p1542_p5 }
 0x3e3   :  { %1550 = shalt.err (!%p1547_p7)
}
 0x3e4   :  { %1095 = dma.vmem_to_hbm [thread:$0]  %s1093_s2, 16, %s1913_s11, [#allocation4]  }
 0x3e5   :  { %1551 = dma.done.wait [#allocation4], 16  }
 0x3e6   :  { %1552 = vsyncadd [#allocation4], 4294967280 }
 0x3e7   :  { %1099 = vsyncpa [#allocation4], 1 }

</bundles_post_ra>
